<compile_context>
chip_gen: v7x
topology: tpu7x:2x2x1
jax: 0.10.0
libtpu: 0.0.40
codegen_flags: <defaults>
</compile_context>

<pallas_src>
import jax
import jax.numpy as jnp
from jax.experimental import pallas as pl
from jax.experimental.pallas import tpu as pltpu


def _cdiv(a, b):
    return -(-a // b)


def _make_pose_flattener_kernel(in_channels):
    C = in_channels

    def kernel(x_ref, o_ref):
        # x_ref: (BN, C, T, V) block,  o_ref: (BN, T, C*V) block.
        # Assemble the channel-major flattened slab in registers (C is tiny,
        # so this is a couple of cheap lane concatenations on the XLU), then
        # issue ONE full-width store instead of C masked lane-offset stores.
        parts = [x_ref[:, c, :, :] for c in range(C)]   # each (BN, T, V)
        o_ref[...] = jnp.concatenate(parts, axis=-1)    # (BN, T, C*V)

    return kernel


def _pick_block_n(N, C, T, V, dtype, vmem_budget_bytes):
    """Choose how many batch elements to process per grid step.

    Big enough to amortize the ~0.35 us per-step pipeline overhead, small
    enough that the double-buffered, (8,128)-tile-padded VMEM footprint of
    (input block + output block) stays under a conservative budget.
    """
    itemsize = jnp.dtype(dtype).itemsize
    n_out = C * V
    # One VMEM tile is (8 * packing) sublanes x 128 lanes == 4 KiB, any dtype.
    packing = max(1, 4 // itemsize)
    sublanes = 8 * packing
    tile_bytes = 8 * 128 * 4
    in_tiles_per_elem = C * _cdiv(T, sublanes) * _cdiv(V, 128)
    out_tiles_per_elem = _cdiv(T, sublanes) * _cdiv(n_out, 128)
    per_elem_db_bytes = 2 * (in_tiles_per_elem + out_tiles_per_elem) * tile_bytes
    block_n = max(1, vmem_budget_bytes // per_elem_db_bytes)
    block_n = min(block_n, N)

    # If everything fits into one block but each half would still carry a
    # substantial payload (>= ~0.5 MiB), split into 2 grid steps so the
    # "parallel" batch axis can be sharded across v7x's two TensorCores.
    elem_payload = C * T * V * itemsize
    if block_n >= N and N > 1 and (N // 2) * elem_payload >= (512 * 1024):
        block_n = _cdiv(N, 2)
    return block_n


def pose_flattener(x, in_channels=3, num_points=27, block_n=None,
                   vmem_budget_bytes=8 * 1024 * 1024):
    """Pallas implementation of PoseFlattener.forward.

    Args:
      x: (N, in_channels, T, num_points) array.
    Returns:
      (N, T, in_channels * num_points) array, same dtype as x.
    """
    N, C, T, V = x.shape
    assert C == in_channels and V == num_points
    n_out = C * V

    if block_n is None:
        block_n = _pick_block_n(N, C, T, V, x.dtype, vmem_budget_bytes)
    block_n = max(1, min(block_n, N))

    grid = (_cdiv(N, block_n),)
    kernel = _make_pose_flattener_kernel(C)

    # A partial last block (N % block_n != 0) is fine: out-of-bounds input
    # rows read padding and the corresponding output rows are dropped, which
    # is correct for a pure copy/permutation kernel.
    return pl.pallas_call(
        kernel,
        out_shape=jax.ShapeDtypeStruct((N, T, n_out), x.dtype),
        grid=grid,
        in_specs=[pl.BlockSpec((block_n, C, T, V), lambda n: (n, 0, 0, 0))],
        out_specs=pl.BlockSpec((block_n, T, n_out), lambda n: (n, 0, 0)),
        compiler_params=pltpu.CompilerParams(
            dimension_semantics=("parallel",),
        ),
    )(x)


def pose_flattener_ref(x):
    """Pure-JAX reference matching the PyTorch module exactly."""
    N, C, T, V = x.shape
    return jnp.transpose(x, (0, 2, 1, 3)).reshape(N, T, C * V)


if __name__ == "__main__":
    # Small shapes consistent with the module defaults:
    # batch N=2, in_channels C=3, sequence T=8, joints V=27.
    N, C, T, V = 2, 3, 8, 27
    key = jax.random.PRNGKey(0)
    x = jax.random.normal(key, (N, C, T, V), dtype=jnp.float32)

    out = pose_flattener(x, in_channels=C, num_points=V)
    out = jax.block_until_ready(out)

    ref = pose_flattener_ref(x)
    assert out.shape == (N, T, C * V), out.shape
    assert out.dtype == x.dtype
    assert jnp.allclose(out, ref), "Pallas PoseFlattener mismatch vs reference"

    # Also exercise the multi-block grid path, including a partial last block
    # (N not divisible by block_n), to validate the batched tiling.
    N2 = 5
    x2 = jax.random.normal(jax.random.PRNGKey(1), (N2, C, T, V), dtype=jnp.float32)
    out2 = jax.block_until_ready(pose_flattener(x2, C, V, block_n=2))
    assert jnp.allclose(out2, pose_flattener_ref(x2)), "multi-block mismatch"

    # And a bf16 path (sublane packing changes the VMEM tile math).
    x3 = jax.random.normal(jax.random.PRNGKey(2), (3, C, T, V)).astype(jnp.bfloat16)
    out3 = jax.block_until_ready(pose_flattener(x3, C, V))
    assert jnp.array_equal(out3, pose_flattener_ref(x3)), "bf16 mismatch"

    print("KERNEL_OK")
</pallas_src>

<mosaic_0001>
module attributes {stable_mosaic.version = 11 : i64} {
  func.func @kernel(%arg0: i32, %arg1: memref<2x3x8x27xf32, #tpu.memory_space<vmem>>, %arg2: memref<2x8x81xf32, #tpu.memory_space<vmem>>) attributes {dimension_semantics = [#tpu.dimension_semantics<parallel>], iteration_bounds = array<i64: 1>, scalar_prefetch = 0 : i64, scratch_operands = 0 : i64, tpu.core_type = #tpu.core_type<tc>, window_params = [{transform_indices = @transform_0, window_bounds = array<i64: 2, 3, 8, 27>}, {transform_indices = @transform_1, window_bounds = array<i64: 2, 8, 81>}]} {
    %c0 = arith.constant 0 : index
    %c0_0 = arith.constant 0 : index
    %c0_1 = arith.constant 0 : index
    %c0_2 = arith.constant 0 : index
    %0 = vector.load %arg1[%c0, %c0_0, %c0_1, %c0_2] : memref<2x3x8x27xf32, #tpu.memory_space<vmem>>, vector<2x1x8x27xf32>
    %1 = vector.shape_cast %0 : vector<2x1x8x27xf32> to vector<2x8x27xf32>
    %c0_3 = arith.constant 0 : index
    %c1 = arith.constant 1 : index
    %c0_4 = arith.constant 0 : index
    %c0_5 = arith.constant 0 : index
    %2 = vector.load %arg1[%c0_3, %c1, %c0_4, %c0_5] : memref<2x3x8x27xf32, #tpu.memory_space<vmem>>, vector<2x1x8x27xf32>
    %3 = vector.shape_cast %2 : vector<2x1x8x27xf32> to vector<2x8x27xf32>
    %c0_6 = arith.constant 0 : index
    %c2 = arith.constant 2 : index
    %c0_7 = arith.constant 0 : index
    %c0_8 = arith.constant 0 : index
    %4 = vector.load %arg1[%c0_6, %c2, %c0_7, %c0_8] : memref<2x3x8x27xf32, #tpu.memory_space<vmem>>, vector<2x1x8x27xf32>
    %5 = vector.shape_cast %4 : vector<2x1x8x27xf32> to vector<2x8x27xf32>
    %6 = tpu.concatenate %1, %3, %5 in 2 : vector<2x8x27xf32>, vector<2x8x27xf32>, vector<2x8x27xf32> -> vector<2x8x81xf32>
    %c0_9 = arith.constant 0 : index
    %c0_10 = arith.constant 0 : index
    %c0_11 = arith.constant 0 : index
    %7 = vector.load %arg2[%c0_9, %c0_10, %c0_11] : memref<2x8x81xf32, #tpu.memory_space<vmem>>, vector<2x8x81xf32>
    tpu.vector_store %arg2[%c0_9, %c0_10, %c0_11], %6 {strides = array<i32>} : memref<2x8x81xf32, #tpu.memory_space<vmem>>, vector<2x8x81xf32>,
    return
  }
  func.func @transform_0(%arg0: i32) -> (i32, i32, i32, i32) {
    %c0_i32 = arith.constant 0 : i32
    %c0_i32_0 = arith.constant 0 : i32
    %c0_i32_1 = arith.constant 0 : i32
    %c0_i32_2 = arith.constant 0 : i32
    return %arg0, %c0_i32, %c0_i32_0, %c0_i32_1 : i32, i32, i32, i32
  }
  func.func @transform_1(%arg0: i32) -> (i32, i32, i32) {
    %c0_i32 = arith.constant 0 : i32
    %c0_i32_0 = arith.constant 0 : i32
    %c0_i32_1 = arith.constant 0 : i32
    return %arg0, %c0_i32, %c0_i32_0 : i32, i32, i32
  }
}

</mosaic_0001>

<bundles_post_ra>
// kernel: tpu_custom_call.1
= control target key start
LH: loop header
LB: loop body
LE: loop exit
PB: predicated region body
PF: predicated region fallthrough
CT: control target
= control target key end

     0   :  { %6 = vsyncpa [#allocation3], 0  ;;  %s173_s0 = inlined_call_operand.hbm [shape: f32[2,3,8,27], index: 0, kind: input, shape index: {}]   ;;  %s174_s1 = inlined_call_operand.hbm [shape: f32[2,8,81], index: 1, kind: output, shape index: {}]  }
   0x1   :  { %7 = vsyncpa [#allocation4], 0  ;;  %s127_s6 = smov [#allocation2]   ;;  %s79_s10 = scalar_lea.hbm %s173_s0, 768 }
   0x2   :  { %s13_s7 = sshll.u32 %s127_s6, 4  ;;  %p80_p0 = scmp.ne.s32.totalorder %s173_s0, %s79_s10  ;;  %s14_s7 = int_to_ptr.vmem [resolvable:$true] %s13_s7 }
   0x3   :  { %p83_p1 = scmp.lt.u32.totalorder %s79_s10, %s173_s0 }
   0x5   :  { %p85_p2 = pnand %p83_p1, %p80_p0 }
   0x7   :  { %88 = shalt.err (!%p85_p2)
}
   0x8   :  { %s89_s15 = scalar_lea.vmem %s14_s7, 768  ;;  %p94_p4 = scmp.lt.s32.totalorder %s14_s7, %s14_s7 }
   0x9   :  { %p90_p3 = scmp.ne.s32.totalorder %s14_s7, %s89_s15  ;;  %p95_p5 = scmp.lt.s32.totalorder %s89_s15, %s89_s15 }
   0xb   :  { %p96_p6 = por %p95_p5, %p94_p4 }
   0xd   :  { %p97_p7 = pnand %p96_p6, %p90_p3 }
   0xf   :  { %100 = shalt.err (!%p97_p7)
}
  0x10   :  { %s128_s16 = smov 128   ;;  %s129_s17 = smov 8  }
  0x11   :  { %19 = dma.hbm_to_vmem [thread:$0]  %s173_s0, 768, %s14_s7, [#allocation3], %s128_s16, %s128_s16, %s129_s17  }
  0x12   :  { %123 = dma.done.wait [#allocation3], 768  }
  0x13   :  { %124 = vsyncadd [#allocation3], 4294966528  ;;  %v26_v0 = vld [vmem:[#allocation2 + $0x8] sm:$0xff]  ;;  %v29_v1 = vld [vmem:[#allocation2 + $0x10] sm:$0xff]  ;;  %s130_s20 = smov 27   ;;  %s131_s21 = smov 54  }
  0x14   :  { %33 = vrot.lane.b32.xlu0 %v26_v0, %s130_s20  ;;  %41 = vrot.lane.b32.xlu1 %v29_v1, %s131_s21  ;;  %v27_v2 = vld [vmem:[#allocation2 + $0x20] sm:$0xff]  ;;  %v30_v3 = vld [vmem:[#allocation2 + $0x28] sm:$0xff]  ;;  %vm47_vm0 = vcmask 220160   ;;  %vm50_vm1 = vcmask 441344   ;;  %vm53_vm2 = vcmask 662528   ;;  %v24_v9 = vld [vmem:[#allocation2 + $0x18] sm:$0xff] }
  0x15   :  { %v23_v4 = vld [vmem:[#allocation2] sm:$0xff]  ;;  %s132_s0 = smov [#allocation5]  }
  0x16   :  { %s61_s22 = sshll.u32 %s132_s0, 4  ;;  %s62_s22 = int_to_ptr.vmem [resolvable:$true] %s61_s22 }
  0x17   :  { %s101_s23 = scalar_lea.vmem %s62_s22, 256  ;;  %p106_p9 = scmp.lt.s32.totalorder %s62_s22, %s62_s22 }
  0x18   :  { %35 = vrot.lane.b32.xlu0 %v27_v2, %s130_s20  ;;  %43 = vrot.lane.b32.xlu1 %v30_v3, %s131_s21  ;;  %p102_p8 = scmp.ne.s32.totalorder %s62_s22, %s101_s23  ;;  %p107_p10 = scmp.lt.s32.totalorder %s101_s23, %s101_s23 }
  0x1a   :  { %p108_p11 = por %p107_p10, %p106_p9 }
  0x1c   :  { %p109_p12 = pnand %p108_p11, %p102_p8 }
  0x86   :  { %v34_v5 = vpop.permute.xlu0 %33  ;;  %v42_v6 = vpop.permute.xlu1 %41 }
  0x87   :  { %v48_v7 = vsel %vm47_vm0, %v23_v4, %v34_v5 }
  0x88   :  { %v51_v8 = vsel %vm50_vm1, %v48_v7, %v42_v6 }
  0x89   :  { %54 = vst.msk [vmem:[#allocation5] sm:$0xff] %vm53_vm2, %v51_v8 }
  0x8a   :  { %v36_v10 = vpop.permute.xlu0 %35  ;;  %v44_v11 = vpop.permute.xlu1 %43 }
  0x8b   :  { %v49_v12 = vsel %vm47_vm0, %v24_v9, %v36_v10 }
  0x8c   :  { %v52_v13 = vsel %vm50_vm1, %v49_v12, %v44_v11 }
  0x8d   :  { %55 = vst.msk [vmem:[#allocation5 + $0x8] sm:$0xff] %vm53_vm2, %v52_v13 }
  0x8e   :  { %112 = shalt.err (!%p109_p12)
}
  0x8f   :  { %s113_s26 = scalar_lea.hbm %s174_s1, 256 }
  0x90   :  { %p114_p13 = scmp.ne.s32.totalorder %s174_s1, %s113_s26  ;;  %p117_p0 = scmp.lt.u32.totalorder %s113_s26, %s174_s1 }
  0x92   :  { %p119_p1 = pnand %p117_p0, %p114_p13 }
  0x94   :  { %122 = shalt.err (!%p119_p1)
}
  0x95   :  { %67 = dma.vmem_to_hbm [thread:$0]  %s62_s22, 256, %s174_s1, [#allocation4], %s128_s16, %s128_s16, %s129_s17  }
  0x96   :  { %125 = dma.done.wait [#allocation4], 256  }
  0x97   :  { %126 = vsyncadd [#allocation4], 4294967040 }
  0x98   :  { %71 = vsyncpa [#allocation3], 1 }
  0x99   :  { %72 = vsyncpa [#allocation4], 1 }

</bundles_post_ra>
